<compile_context>
chip_gen: v7x
topology: tpu7x:2x2x1
jax: 0.10.0
libtpu: 0.0.40
codegen_flags: <defaults>
</compile_context>

<pallas_src>
import jax
import jax.numpy as jnp
from jax import lax
from jax.experimental import pallas as pl
from jax.experimental.pallas import tpu as pltpu


def _elu(x, alpha):
    # PyTorch nn.ELU(alpha): x if x > 0 else alpha * (exp(x) - 1).
    # exp(min(x, 0)) keeps the negative branch finite for any input
    # (no inf intermediates); identical forward result.
    return jnp.where(x > 0, x, alpha * (jnp.exp(jnp.minimum(x, 0.0)) - 1.0))


def discriminator_kernel(x_ref, w1_ref, b1_ref, w2_ref, b2_ref, w3_ref, b3_ref,
                         out_ref, feat_ref):
    # Feature-major orientation: every intermediate is (features, TB), i.e.
    # batch lives in the 128-wide lane dimension -> lane-dense EUP/VPU work.
    x = x_ref[...]                                            # (TB, D)

    # h1.T = w1 @ x.T : contract the shared D axis (last dim of both
    # operands); the x-side "transpose" is absorbed inside the MXU path.
    dn_last_last = (((1,), (1,)), ((), ()))
    h1_t = lax.dot_general(w1_ref[...], x, dn_last_last,
                           preferred_element_type=jnp.float32) + b1_ref[...]
    h1_t = _elu(h1_t, 0.05)                                   # (H, TB)

    # feat.T = w2 @ h1.T : standard contraction (w2 last dim, h1_t first dim).
    dn_std = (((1,), (0,)), ((), ()))
    feat_t = lax.dot_general(w2_ref[...], h1_t, dn_std,
                             preferred_element_type=jnp.float32) + b2_ref[...]
    feat_t = _elu(feat_t, 0.05)                               # (H, TB)

    # Module contract: feat is (B, H).  Single XLU transpose right before the
    # store; no wrapper-side transpose of the dominant array.
    feat_ref[...] = feat_t.T.astype(feat_ref.dtype)

    # out = feat.view(B, -1) is a no-op for 2-D input.
    # l3 (hidden -> 1): VPU multiply + sublane (feature-axis) reduction keeps
    # the result lane-dense as (1, TB).  No cross-batch (lane) reduction, so
    # stale lanes in a ragged last block stay confined to their own columns.
    logit = jnp.sum(feat_t * w3_ref[...], axis=0, keepdims=True) + b3_ref[...]

    # Numerically-stable, exact sigmoid (no inf intermediates).
    e = jnp.exp(-jnp.abs(logit))
    inv = 1.0 / (1.0 + e)
    out_ref[...] = jnp.where(logit >= 0.0, inv, e * inv).astype(out_ref.dtype)


def _round_up(x: int, m: int) -> int:
    return (x + m - 1) // m * m


def _tile_b(batch: int) -> int:
    # Single grid step for small batches: block == full array, so the (8, 128)
    # divisibility constraint does not apply.
    if batch <= 1024:
        return batch
    # Multi-step: the logit output block is (1, tb), so tb (a lane dimension)
    # must be a multiple of 128.  Target an even number of >= 4 steps so
    # v7x's two TensorCores stay balanced and the pipeline has a steady state
    # (harmless on single-TC v5e/v6e), and cap tb at 1024: with 128-lane
    # padding the double-buffered x/feat/out tiles then total ~2.5 MiB, far
    # under the 16 MiB v5e scoped-VMEM default.
    target_steps = max(4, 2 * ((pl.cdiv(batch, 1024) + 1) // 2))
    return min(1024, _round_up(pl.cdiv(batch, target_steps), 128))


def time_series_discriminator(x, params):
    """x: (B, data_dim) f32.  Returns (out: (B, 1), feat: (B, hidden))."""
    w1, b1, w2, b2, w3, b3 = params
    B, D = x.shape
    H = w1.shape[0]

    tb = _tile_b(B)
    grid = (pl.cdiv(B, tb),)

    # Column-vector biases / l3 weight for sublane broadcast in the
    # feature-major kernel (metadata-only reshapes).
    b1c = b1.reshape(H, 1)
    b2c = b2.reshape(H, 1)
    w3c = w3.reshape(H, 1)
    b3c = b3.reshape(1, 1)

    def resident(shape):
        # Constant index_map -> block never changes -> per-step DMA elided;
        # weights/biases stay VMEM-resident for the whole grid.
        return pl.BlockSpec(shape, lambda i: (0, 0))

    cost = pl.CostEstimate(
        flops=int(2 * B * (D * H + H * H + H)),
        transcendentals=int(B * (2 * H + 1)),
        bytes_accessed=int(4 * (B * (D + H + 1) + H * D + H * H + 3 * H + 1)),
    )

    out_t, feat = pl.pallas_call(
        discriminator_kernel,
        out_shape=(
            jax.ShapeDtypeStruct((1, B), jnp.float32),   # lane-dense logits
            jax.ShapeDtypeStruct((B, H), jnp.float32),   # feat, module layout
        ),
        grid=grid,
        in_specs=[
            pl.BlockSpec((tb, D), lambda i: (i, 0)),     # x tile (TB, D)
            resident((H, D)),                            # w1 as nn.Linear stores it
            resident((H, 1)),                            # b1
            resident((H, H)),                            # w2
            resident((H, 1)),                            # b2
            resident((H, 1)),                            # w3 column
            resident((1, 1)),                            # b3
        ],
        out_specs=(
            pl.BlockSpec((1, tb), lambda i: (0, i)),     # out.T : lane-dense store
            pl.BlockSpec((tb, H), lambda i: (i, 0)),     # feat
        ),
        compiler_params=pltpu.CompilerParams(
            dimension_semantics=("parallel",)),
        cost_estimate=cost,
    )(x, w1, b1c, w2, b2c, w3c, b3c)

    # (1, B) -> (B, 1): identical element order, tiny (4*B bytes) array.
    return out_t.reshape(B, 1), feat


def init_params(key, data_dim, hidden_size):
    """Deterministic synthetic init mirroring nn.Linear parameter shapes."""
    ks = jax.random.split(key, 6)

    def unif(k, shape, fan_in):
        bound = 1.0 / jnp.sqrt(fan_in)
        return jax.random.uniform(k, shape, jnp.float32, -bound, bound)

    w1 = unif(ks[0], (hidden_size, data_dim), data_dim)
    b1 = unif(ks[1], (hidden_size,), data_dim)
    w2 = unif(ks[2], (hidden_size, hidden_size), hidden_size)
    b2 = unif(ks[3], (hidden_size,), hidden_size)
    w3 = unif(ks[4], (1, hidden_size), hidden_size)
    b3 = unif(ks[5], (1,), hidden_size)
    return (w1, b1, w2, b2, w3, b3)


def reference_forward(x, params):
    """Pure-JAX reference of the PyTorch forward, for validation."""
    w1, b1, w2, b2, w3, b3 = params
    h1 = _elu(jnp.dot(x, w1.T, preferred_element_type=jnp.float32) + b1, 0.05)
    feat = _elu(jnp.dot(h1, w2.T, preferred_element_type=jnp.float32) + b2, 0.05)
    logit = jnp.dot(feat.reshape(feat.shape[0], -1), w3.T,
                    preferred_element_type=jnp.float32) + b3
    return jax.nn.sigmoid(logit), feat


def _check(batch, data_dim, hidden_size, key):
    k_x, k_p = jax.random.split(key)
    x = jax.random.normal(k_x, (batch, data_dim), dtype=jnp.float32)
    params = init_params(k_p, data_dim, hidden_size)

    out, feat = time_series_discriminator(x, params)
    jax.block_until_ready((out, feat))

    ref_out, ref_feat = reference_forward(x, params)
    assert out.shape == (batch, 1) and feat.shape == (batch, hidden_size)
    assert jnp.allclose(feat, ref_feat, atol=1e-5, rtol=1e-5)
    assert jnp.allclose(out, ref_out, atol=1e-5, rtol=1e-4)


if __name__ == "__main__":
    key = jax.random.PRNGKey(0)
    k_small, k_big = jax.random.split(key)

    data_dim, hidden_size = 16, 32

    # Small shape (single grid step, blocks == full arrays).
    _check(8, data_dim, hidden_size, k_small)

    # Larger, ragged batch: exercises the multi-step pipelined grid
    # (tb = 768 -> 6 even steps) and the partial last block.
    _check(4100, data_dim, hidden_size, k_big)

    print("KERNEL_OK")
</pallas_src>

<mosaic_0001>
module attributes {stable_mosaic.version = 11 : i64} {
  func.func @discriminator_kernel(%arg0: i32, %arg1: memref<8x16xf32, #tpu.memory_space<vmem>>, %arg2: memref<32x16xf32, #tpu.memory_space<vmem>>, %arg3: memref<32x1xf32, #tpu.memory_space<vmem>>, %arg4: memref<32x32xf32, #tpu.memory_space<vmem>>, %arg5: memref<32x1xf32, #tpu.memory_space<vmem>>, %arg6: memref<32x1xf32, #tpu.memory_space<vmem>>, %arg7: memref<1x1xf32, #tpu.memory_space<vmem>>, %arg8: memref<1x8xf32, #tpu.memory_space<vmem>>, %arg9: memref<8x32xf32, #tpu.memory_space<vmem>>) attributes {dimension_semantics = [#tpu.dimension_semantics<parallel>], iteration_bounds = array<i64: 1>, scalar_prefetch = 0 : i64, scratch_operands = 0 : i64, tpu.core_type = #tpu.core_type<tc>, window_params = [{transform_indices = @transform_0, window_bounds = array<i64: 8, 16>}, {pipeline_mode = #tpu.pipeline_mode<synchronous>, transform_indices = @transform_1, window_bounds = array<i64: 32, 16>}, {pipeline_mode = #tpu.pipeline_mode<synchronous>, transform_indices = @transform_2, window_bounds = array<i64: 32, 1>}, {pipeline_mode = #tpu.pipeline_mode<synchronous>, transform_indices = @transform_3, window_bounds = array<i64: 32, 32>}, {pipeline_mode = #tpu.pipeline_mode<synchronous>, transform_indices = @transform_4, window_bounds = array<i64: 32, 1>}, {pipeline_mode = #tpu.pipeline_mode<synchronous>, transform_indices = @transform_5, window_bounds = array<i64: 32, 1>}, {pipeline_mode = #tpu.pipeline_mode<synchronous>, transform_indices = @transform_6, window_bounds = array<i64: 1, 1>}, {transform_indices = @transform_7, window_bounds = array<i64: 1, 8>}, {transform_indices = @transform_8, window_bounds = array<i64: 8, 32>}]} {
    %c0 = arith.constant 0 : index
    %c0_0 = arith.constant 0 : index
    %0 = vector.load %arg1[%c0, %c0_0] : memref<8x16xf32, #tpu.memory_space<vmem>>, vector<8x16xf32>
    %c0_1 = arith.constant 0 : index
    %c0_2 = arith.constant 0 : index
    %1 = vector.load %arg2[%c0_1, %c0_2] : memref<32x16xf32, #tpu.memory_space<vmem>>, vector<32x16xf32>
    %cst = arith.constant dense<0.000000e+00> : vector<32x8xf32>
    %2 = tpu.matmul %1, %0, %cst {dimension_numbers = #tpu.dot_dimension_numbers<[1], [1], [0], [0], [0, 0, 1, 0], [], []>} : vector<32x16xf32>, vector<8x16xf32>, vector<32x8xf32> -> vector<32x8xf32>
    %c0_3 = arith.constant 0 : index
    %c0_4 = arith.constant 0 : index
    %3 = vector.load %arg3[%c0_3, %c0_4] : memref<32x1xf32, #tpu.memory_space<vmem>>, vector<32x1xf32>
    %4 = vector.broadcast %3 : vector<32x1xf32> to vector<32x8xf32>
    %5 = arith.addf %2, %4 : vector<32x8xf32>
    %cst_5 = arith.constant 0.000000e+00 : f32
    %6 = vector.broadcast %cst_5 : f32 to vector<32x8xf32>
    %7 = arith.cmpf ogt, %5, %6 : vector<32x8xf32>
    %cst_6 = arith.constant 0.000000e+00 : f32
    %8 = vector.broadcast %cst_6 : f32 to vector<32x8xf32>
    %9 = arith.minimumf %5, %8 : vector<32x8xf32>
    %10 = math.exp %9 : vector<32x8xf32>
    %cst_7 = arith.constant 1.000000e+00 : f32
    %11 = vector.broadcast %cst_7 : f32 to vector<32x8xf32>
    %12 = arith.subf %10, %11 : vector<32x8xf32>
    %cst_8 = arith.constant 5.000000e-02 : f32
    %13 = vector.broadcast %cst_8 : f32 to vector<32x8xf32>
    %14 = arith.mulf %13, %12 : vector<32x8xf32>
    %15 = arith.select %7, %5, %14 : vector<32x8xi1>, vector<32x8xf32>
    %c0_9 = arith.constant 0 : index
    %c0_10 = arith.constant 0 : index
    %16 = vector.load %arg4[%c0_9, %c0_10] : memref<32x32xf32, #tpu.memory_space<vmem>>, vector<32x32xf32>
    %cst_11 = arith.constant dense<0.000000e+00> : vector<32x8xf32>
    %17 = tpu.matmul %16, %15, %cst_11 {dimension_numbers = #tpu.dot_dimension_numbers<[1], [0], [0], [1], [0, 0, 1, 1], [], []>} : vector<32x32xf32>, vector<32x8xf32>, vector<32x8xf32> -> vector<32x8xf32>
    %c0_12 = arith.constant 0 : index
    %c0_13 = arith.constant 0 : index
    %18 = vector.load %arg5[%c0_12, %c0_13] : memref<32x1xf32, #tpu.memory_space<vmem>>, vector<32x1xf32>
    %19 = vector.broadcast %18 : vector<32x1xf32> to vector<32x8xf32>
    %20 = arith.addf %17, %19 : vector<32x8xf32>
    %cst_14 = arith.constant 0.000000e+00 : f32
    %21 = vector.broadcast %cst_14 : f32 to vector<32x8xf32>
    %22 = arith.cmpf ogt, %20, %21 : vector<32x8xf32>
    %cst_15 = arith.constant 0.000000e+00 : f32
    %23 = vector.broadcast %cst_15 : f32 to vector<32x8xf32>
    %24 = arith.minimumf %20, %23 : vector<32x8xf32>
    %25 = math.exp %24 : vector<32x8xf32>
    %cst_16 = arith.constant 1.000000e+00 : f32
    %26 = vector.broadcast %cst_16 : f32 to vector<32x8xf32>
    %27 = arith.subf %25, %26 : vector<32x8xf32>
    %cst_17 = arith.constant 5.000000e-02 : f32
    %28 = vector.broadcast %cst_17 : f32 to vector<32x8xf32>
    %29 = arith.mulf %28, %27 : vector<32x8xf32>
    %30 = arith.select %22, %20, %29 : vector<32x8xi1>, vector<32x8xf32>
    %31 = tpu.transpose %30, [1, 0] : vector<32x8xf32> -> vector<8x32xf32>
    %c0_18 = arith.constant 0 : index
    %c0_19 = arith.constant 0 : index
    %32 = vector.load %arg9[%c0_18, %c0_19] : memref<8x32xf32, #tpu.memory_space<vmem>>, vector<8x32xf32>
    tpu.vector_store %arg9[%c0_18, %c0_19], %31 {strides = array<i32>} : memref<8x32xf32, #tpu.memory_space<vmem>>, vector<8x32xf32>,
    %c0_20 = arith.constant 0 : index
    %c0_21 = arith.constant 0 : index
    %33 = vector.load %arg6[%c0_20, %c0_21] : memref<32x1xf32, #tpu.memory_space<vmem>>, vector<32x1xf32>
    %34 = vector.broadcast %33 : vector<32x1xf32> to vector<32x8xf32>
    %35 = arith.mulf %30, %34 : vector<32x8xf32>
    %cst_22 = arith.constant dense<0.000000e+00> : vector<8xf32>
    %36 = vector.multi_reduction <add>, %35, %cst_22 [0] : vector<32x8xf32> to vector<8xf32>
    %37 = vector.shape_cast %36 : vector<8xf32> to vector<1x8xf32>
    %c0_23 = arith.constant 0 : index
    %c0_24 = arith.constant 0 : index
    %38 = vector.load %arg7[%c0_23, %c0_24] : memref<1x1xf32, #tpu.memory_space<vmem>>, vector<1x1xf32>
    %39 = vector.broadcast %38 : vector<1x1xf32> to vector<1x8xf32>
    %40 = arith.addf %37, %39 : vector<1x8xf32>
    %41 = math.absf %40 : vector<1x8xf32>
    %cst_25 = arith.constant 0.000000e+00 : f32
    %42 = vector.broadcast %cst_25 : f32 to vector<1x8xf32>
    %43 = arith.subf %42, %41 : vector<1x8xf32>
    %44 = math.exp %43 : vector<1x8xf32>
    %cst_26 = arith.constant 1.000000e+00 : f32
    %45 = vector.broadcast %cst_26 : f32 to vector<1x8xf32>
    %46 = arith.addf %45, %44 : vector<1x8xf32>
    %cst_27 = arith.constant 1.000000e+00 : f32
    %47 = vector.broadcast %cst_27 : f32 to vector<1x8xf32>
    %48 = arith.divf %47, %46 : vector<1x8xf32>
    %cst_28 = arith.constant 0.000000e+00 : f32
    %49 = vector.broadcast %cst_28 : f32 to vector<1x8xf32>
    %50 = arith.cmpf oge, %40, %49 : vector<1x8xf32>
    %51 = arith.mulf %44, %48 : vector<1x8xf32>
    %52 = arith.select %50, %48, %51 : vector<1x8xi1>, vector<1x8xf32>
    %c0_29 = arith.constant 0 : index
    %c0_30 = arith.constant 0 : index
    %53 = vector.load %arg8[%c0_29, %c0_30] : memref<1x8xf32, #tpu.memory_space<vmem>>, vector<1x8xf32>
    tpu.vector_store %arg8[%c0_29, %c0_30], %52 {strides = array<i32>} : memref<1x8xf32, #tpu.memory_space<vmem>>, vector<1x8xf32>,
    return
  }
  func.func @transform_0(%arg0: i32) -> (i32, i32) {
    %c0_i32 = arith.constant 0 : i32
    %c0_i32_0 = arith.constant 0 : i32
    return %arg0, %c0_i32 : i32, i32
  }
  func.func @transform_1(%arg0: i32) -> (i32, i32) {
    %c0_i32 = arith.constant 0 : i32
    %c0_i32_0 = arith.constant 0 : i32
    %c0_i32_1 = arith.constant 0 : i32
    return %c0_i32, %c0_i32_0 : i32, i32
  }
  func.func @transform_2(%arg0: i32) -> (i32, i32) {
    %c0_i32 = arith.constant 0 : i32
    %c0_i32_0 = arith.constant 0 : i32
    %c0_i32_1 = arith.constant 0 : i32
    return %c0_i32, %c0_i32_0 : i32, i32
  }
  func.func @transform_3(%arg0: i32) -> (i32, i32) {
    %c0_i32 = arith.constant 0 : i32
    %c0_i32_0 = arith.constant 0 : i32
    %c0_i32_1 = arith.constant 0 : i32
    return %c0_i32, %c0_i32_0 : i32, i32
  }
  func.func @transform_4(%arg0: i32) -> (i32, i32) {
    %c0_i32 = arith.constant 0 : i32
    %c0_i32_0 = arith.constant 0 : i32
    %c0_i32_1 = arith.constant 0 : i32
    return %c0_i32, %c0_i32_0 : i32, i32
  }
  func.func @transform_5(%arg0: i32) -> (i32, i32) {
    %c0_i32 = arith.constant 0 : i32
    %c0_i32_0 = arith.constant 0 : i32
    %c0_i32_1 = arith.constant 0 : i32
    return %c0_i32, %c0_i32_0 : i32, i32
  }
  func.func @transform_6(%arg0: i32) -> (i32, i32) {
    %c0_i32 = arith.constant 0 : i32
    %c0_i32_0 = arith.constant 0 : i32
    %c0_i32_1 = arith.constant 0 : i32
    return %c0_i32, %c0_i32_0 : i32, i32
  }
  func.func @transform_7(%arg0: i32) -> (i32, i32) {
    %c0_i32 = arith.constant 0 : i32
    %c0_i32_0 = arith.constant 0 : i32
    return %c0_i32, %arg0 : i32, i32
  }
  func.func @transform_8(%arg0: i32) -> (i32, i32) {
    %c0_i32 = arith.constant 0 : i32
    %c0_i32_0 = arith.constant 0 : i32
    return %arg0, %c0_i32 : i32, i32
  }
}

</mosaic_0001>

<bundles_post_ra>
// kernel: tpu_custom_call.1
= control target key start
LH: loop header
LB: loop body
LE: loop exit
PB: predicated region body
PF: predicated region fallthrough
CT: control target
= control target key end

     0   :  { %s757_s0 = inlined_call_operand.vmem [shape: f32[8,16], index: 0, kind: input, shape index: {}]   ;;  %s758_s1 = inlined_call_operand.vmem [shape: f32[32,16], index: 1, kind: input, shape index: {}]   ;;  %s759_s2 = inlined_call_operand.vmem [shape: f32[32,1], index: 2, kind: input, shape index: {}]   ;;  %s760_s3 = inlined_call_operand.vmem [shape: f32[32,32], index: 3, kind: input, shape index: {}]   ;;  %s761_s4 = inlined_call_operand.vmem [shape: f32[32,1], index: 4, kind: input, shape index: {}]   ;;  %s762_s5 = inlined_call_operand.vmem [shape: f32[32,1], index: 5, kind: input, shape index: {}]   ;;  %s763_s6 = inlined_call_operand.<no memory space> [shape: f32[1,1], index: 6, kind: input, shape index: {}]   ;;  %s764_s7 = inlined_call_operand.hbm [shape: f32[1,8], index: 7, kind: output, shape index: {0}]   ;;  %s765_s8 = inlined_call_operand.hbm [shape: f32[8,32], index: 8, kind: output, shape index: {1}]  }
   0x1   :  { %v14_v0 = vstv %s763_s6 }
   0x2   :  { %15 = vst [vmem:[#allocation2] sm:$0x1] %v14_v0 }
   0x3   :  { %16 = vsyncpa [#allocation4], 0  ;;  %v32_v1 = vld [vmem:[%s757_s0] sm:$0xff]  ;;  %vm61_vm0 = vcmask 130048   ;;  %v34_v4 = vld [vmem:[%s758_s1 + $0x8] sm:$0xff]  ;;  %v604_v5 = vmov 0  }
   0x4   :  { %v33_v2 = vld [vmem:[%s758_s1] sm:$0xff]  ;;  %500 = vmatprep.subr.msk.mxu0 %vm61_vm0, %v32_v1  ;;  %534 = vset.pattern.permute.xlu0 %v604_v5  ;;  %v39_v6 = vld [vmem:[%s759_s2 + $0x10] sm:$0xff]  ;;  %v38_v8 = vld [vmem:[%s759_s2 + $0x8] sm:$0xff] }
   0x5   :  { %502 = vmatprep.mubr.msk.f32.mxu0 %vm61_vm0, %v33_v2  ;;  %v37_v3 = vld [vmem:[%s759_s2] sm:$0xff]  ;;  %501 = vmatpush3.xpose.msk.msra.mxu0 %vm61_vm0, %v32_v1  ;;  %v35_v7 = vld [vmem:[%s758_s1 + $0x10] sm:$0xff]  ;;  %v40_v9 = vld [vmem:[%s759_s2 + $0x18] sm:$0xff] }
   0x6   :  { %43 = vperm.xlu0 %534, %v37_v3   ;;  %535 = vset.pattern.permute.xlu1 %v604_v5  ;;  %v36_v10 = vld [vmem:[%s758_s1 + $0x18] sm:$0xff] }
   0x7   :  { %53 = vperm.xlu1 %535, %v39_v6  }
   0x8   :  { %503 = vmatmul.mubr.msk.f32.vlgmr.msra.gmra.mrb[0].mxu0 %vm61_vm0, %v34_v4 }
   0x9   :  { %505 = vmatprep.mubr.msk.f32.mxu0 %vm61_vm0, %v35_v7 }
   0xa   :  { %17 = vsyncpa [#allocation6], 0  ;;  %48 = vperm.xlu0 %534, %v38_v8   ;;  %v194_v11 = vld [vmem:[%s761_s4] sm:$0xff]  ;;  %v195_v12 = vld [vmem:[%s761_s4 + $0x8] sm:$0xff]  ;;  %vm218_vm1 = vcmask 261120   ;;  %vm405_vm8 = vcmask 64512  }
   0xb   :  { %58 = vperm.xlu1 %535, %v40_v9   ;;  %v196_v13 = vld [vmem:[%s761_s4 + $0x10] sm:$0xff]  ;;  %v197_v14 = vld [vmem:[%s761_s4 + $0x18] sm:$0xff]  ;;  %v377_v15 = vld [vmem:[%s762_s5] sm:$0xff]  ;;  %vm440_vm11 = vcmask 57344  }
   0xc   :  { %506 = vmatmul.mubr.msk.f32.gmra.mrb[2].mxu0 %vm61_vm0, %v36_v10  ;;  %v378_v16 = vld [vmem:[%s762_s5 + $0x8] sm:$0xff]  ;;  %v379_v17 = vld [vmem:[%s762_s5 + $0x10] sm:$0xff]  ;;  %v380_v18 = vld [vmem:[%s762_s5 + $0x18] sm:$0xff] }
   0xd   :  { %v419_v19 = vld [vmem:[#allocation2] sm:$0x1]  ;;  %v191_v59 = vld [vmem:[%s760_s3 + $0x8] sm:$0xff]  ;;  %v192_v60 = vld [vmem:[%s760_s3 + $0x10] sm:$0xff] }
   0xe   :  { %200 = vperm.xlu0 %534, %v194_v11   ;;  %v190_v20 = vld [vmem:[%s760_s3] sm:$0xff]  ;;  %v193_v61 = vld [vmem:[%s760_s3 + $0x18] sm:$0xff]  ;;  %s605_s3 = smov [#allocation3]  }
   0xf   :  { %205 = vperm.xlu1 %535, %v195_v12   ;;  %516 = vmatprep.mubr.msk.f32.mxu1 %vm218_vm1, %v190_v20  ;;  %s448_s19 = sshll.u32 %s605_s3, 4  ;;  %s449_s19 = int_to_ptr.vmem [resolvable:$true] %s448_s19 }
  0x10   :  { %s556_s20 = scalar_lea.vmem %s449_s19, 16  ;;  %s560_s21 = scalar_lea.vmem %s449_s19, 32 }
  0x11   :  { %p557_p0 = scmp.ne.s32.totalorder %s449_s19, %s556_s20  ;;  %p561_p1 = scmp.lt.s32.totalorder %s449_s19, %s449_s19 }
  0x12   :  { %210 = vperm.xlu0 %534, %v196_v13   ;;  %p562_p2 = scmp.lt.s32.totalorder %s560_s21, %s556_s20 }
  0x13   :  { %215 = vperm.xlu1 %535, %v197_v14  }
  0x14   :  { %p563_p3 = por %p562_p2, %p561_p1 }
  0x16   :  { %383 = vperm.xlu0 %534, %v377_v15   ;;  %p564_p4 = pnand %p563_p3, %p557_p0 }
  0x17   :  { %388 = vperm.xlu1 %535, %v378_v16  }
  0x1a   :  { %393 = vperm.xlu0 %534, %v379_v17  }
  0x1b   :  { %398 = vperm.xlu1 %535, %v380_v18  }
  0x1e   :  { %422 = vperm.xlu0 %534, %v419_v19  }
  0x85   :  { %v44_v21 = vpop.permute.xlu0 %43 }
  0x86   :  { %v54_v22 = vpop.permute.xlu1 %53 }
  0x89   :  { %v49_v23 = vpop.permute.xlu0 %48 }
  0x8a   :  { %v59_v29 = vpop.permute.xlu1 %58 }
  0x8d   :  { %v201_v63 = vpop.permute.xlu0 %200 }
  0x8e   :  { %v206_v62 = vpop.permute.xlu1 %205 }
  0x91   :  { %v211_v8 = vpop.permute.xlu0 %210 }
  0x92   :  { %v216_v5 = vpop.permute.xlu1 %215 }
  0xdb   :  { %v504_v24 = vpop.f32.mrb[0].mxu0 }
  0xdc   :  { %v149_v25 = vadd.f32 %v504_v24, %v49_v23  ;;  %v143_v26 = vpop.f32.mrb[1].mxu0  ;;  %v384_v24 = vpop.permute.xlu0 %383 }
  0xdd   :  { %v144_v27 = vadd.f32 %v143_v26, %v44_v21 }
  0xde   :  { %v167_v28 = vmin.f32 %v149_v25, 0.0  ;;  %vm163_vm2 = vcmp.gt.f32.partialorder %v149_v25, 0.0 }
  0xdf   :  { %v166_v30 = vmin.f32 %v144_v27, 0.0  ;;  %v507_v31 = vpop.f32.mrb[2].mxu0  ;;  %vm162_vm3 = vcmp.gt.f32.partialorder %v144_v27, 0.0 }
  0xe0   :  { %v172_v32 = vmul.f32 1.442695, %v167_v28  ;;  %v159_v33 = vadd.f32 %v507_v31, %v59_v29  ;;  %v153_v34 = vpop.f32.mrb[3].mxu0 }
  0xe1   :  { %v170_v35 = vmul.f32 1.442695, %v166_v30  ;;  %v154_v36 = vadd.f32 %v153_v34, %v54_v22 }
  0xe2   :  { %536 = vpow2.f32 %v172_v32  ;;  %v169_v37 = vmin.f32 %v159_v33, 0.0  ;;  %vm165_vm4 = vcmp.gt.f32.partialorder %v159_v33, 0.0 }
  0xe3   :  { %538 = vpow2.f32 %v170_v35  ;;  %v168_v38 = vmin.f32 %v154_v36, 0.0  ;;  %vm164_vm5 = vcmp.gt.f32.partialorder %v154_v36, 0.0 }
  0xe4   :  { %v176_v39 = vmul.f32 1.442695, %v169_v37 }
  0xe5   :  { %v174_v40 = vmul.f32 1.442695, %v168_v38 }
  0xe6   :  { %540 = vpow2.f32 %v176_v39  ;;  %v394_v39 = vpop.permute.xlu0 %393 }
  0xe7   :  { %542 = vpow2.f32 %v174_v40 }
  0xec   :  { %v537_v41 = vpop.eup %536 }
  0xed   :  { %v539_v42 = vpop.eup %538  ;;  %v476_v43 = vadd.f32 -1.0, %v537_v41 }
  0xee   :  { %v475_v44 = vadd.f32 -1.0, %v539_v42 }
  0xef   :  { %v183_v45 = vmul.f32 0.05, %v476_v43 }
  0xf0   :  { %v541_v46 = vpop.eup %540  ;;  %v182_v47 = vmul.f32 0.05, %v475_v44 }
  0xf1   :  { %v543_v48 = vpop.eup %542  ;;  %v478_v49 = vadd.f32 -1.0, %v541_v46  ;;  %v187_v50 = vsel %vm163_vm2, %v149_v25, %v183_v45  ;;  %v389_v25 = vpop.permute.xlu1 %388 }
  0xf2   :  { %v477_v51 = vadd.f32 -1.0, %v543_v48  ;;  %v186_v52 = vsel %vm162_vm3, %v144_v27, %v182_v47  ;;  %v425_v48 = vlaneseq }
  0xf3   :  { %v185_v53 = vmul.f32 0.05, %v478_v49  ;;  %v522_v54 = vpack.c.bf16 %v187_v50, %v186_v52 }
  0xf4   :  { %v184_v55 = vmul.f32 0.05, %v477_v51  ;;  %v426_v51 = vshrl.u32 %v425_v48, 7 }
  0xf5   :  { %523 = vmatprep.subr.bf16.mxu1 %v522_v54  ;;  %v189_v56 = vsel %vm165_vm4, %v159_v33, %v185_v53  ;;  %v399_v40 = vpop.permute.xlu1 %398 }
  0xf6   :  { %525 = vmatpush3.bf16.msra.mxu1 %v522_v54  ;;  %v188_v57 = vsel %vm164_vm5, %v154_v36, %v184_v55  ;;  %v427_v54 = vsub.s32 0, %v426_v51 }
  0xf7   :  { %v526_v58 = vpack.c.bf16 %v189_v56, %v188_v57  ;;  %v423_v56 = vpop.permute.xlu0 %422 }
  0xf9   :  { %527 = vmatprep.subr.bf16.mxu1 %v526_v58 }
  0xfa   :  { %529 = vmatpush3.bf16.msra.mxu1 %v526_v58  ;;  %v428_v58 = vrot.slane %v423_v56, %v427_v54 }
  0xfd   :  { %517 = vmatmul.mubr.msk.f32.vlgmr.msra.gmra.mrb[0].mxu1 %vm218_vm1, %v191_v59 }
  0xfe   :  { %519 = vmatprep.mubr.msk.f32.mxu1 %vm218_vm1, %v192_v60 }
 0x101   :  { %520 = vmatmul.mubr.msk.f32.gmra.mrb[2].mxu1 %vm218_vm1, %v193_v61 }
 0x1d0   :  { %v518_v0 = vpop.f32.mrb[0].mxu1 }
 0x1d1   :  { %v303_v1 = vadd.f32 %v518_v0, %v206_v62  ;;  %v297_v2 = vpop.f32.mrb[1].mxu1 }
 0x1d2   :  { %v298_v3 = vadd.f32 %v297_v2, %v201_v63 }
 0x1d3   :  { %v321_v4 = vmin.f32 %v303_v1, 0.0  ;;  %vm317_vm6 = vcmp.gt.f32.partialorder %v303_v1, 0.0 }
 0x1d4   :  { %v320_v6 = vmin.f32 %v298_v3, 0.0  ;;  %v521_v7 = vpop.f32.mrb[2].mxu1  ;;  %vm316_vm7 = vcmp.gt.f32.partialorder %v298_v3, 0.0 }
 0x1d5   :  { %v326_v9 = vmul.f32 1.442695, %v321_v4  ;;  %v313_v10 = vadd.f32 %v521_v7, %v216_v5  ;;  %v307_v11 = vpop.f32.mrb[3].mxu1 }
 0x1d6   :  { %v324_v12 = vmul.f32 1.442695, %v320_v6  ;;  %v308_v13 = vadd.f32 %v307_v11, %v211_v8 }
 0x1d7   :  { %544 = vpow2.f32 %v326_v9  ;;  %v323_v14 = vmin.f32 %v313_v10, 0.0  ;;  %vm319_vm9 = vcmp.gt.f32.partialorder %v313_v10, 0.0 }
 0x1d8   :  { %546 = vpow2.f32 %v324_v12  ;;  %v322_v15 = vmin.f32 %v308_v13, 0.0  ;;  %vm318_vm10 = vcmp.gt.f32.partialorder %v308_v13, 0.0 }
 0x1d9   :  { %v330_v16 = vmul.f32 1.442695, %v323_v14 }
 0x1da   :  { %v328_v17 = vmul.f32 1.442695, %v322_v15 }
 0x1db   :  { %548 = vpow2.f32 %v330_v16 }
 0x1dc   :  { %550 = vpow2.f32 %v328_v17 }
 0x1e1   :  { %v545_v18 = vpop.eup %544 }
 0x1e2   :  { %v547_v19 = vpop.eup %546  ;;  %v484_v20 = vadd.f32 -1.0, %v545_v18 }
 0x1e3   :  { %v483_v21 = vadd.f32 -1.0, %v547_v19 }
 0x1e4   :  { %v337_v22 = vmul.f32 0.05, %v484_v20 }
 0x1e5   :  { %v549_v23 = vpop.eup %548  ;;  %v336_v26 = vmul.f32 0.05, %v483_v21 }
 0x1e6   :  { %v551_v27 = vpop.eup %550  ;;  %v341_v28 = vsel %vm317_vm6, %v303_v1, %v337_v22  ;;  %v486_v29 = vadd.f32 -1.0, %v549_v23 }
 0x1e7   :  { %v340_v30 = vsel %vm316_vm7, %v298_v3, %v336_v26  ;;  %v402_v31 = vmul.f32 %v389_v25, %v341_v28  ;;  %v485_v32 = vadd.f32 -1.0, %v551_v27 }
 0x1e8   :  { %344 = vxpose.xlu1.b32.start [1/4] (short) (narrow) %v340_v30, 8  ;;  %v401_v33 = vmul.f32 %v384_v24, %v340_v30  ;;  %v339_v34 = vmul.f32 0.05, %v486_v29 }
 0x1e9   :  { %v407_v35 = vsel %vm405_vm8, %v402_v31, 0.0  ;;  %v338_v36 = vmul.f32 0.05, %v485_v32 }
 0x1ea   :  { %v406_v37 = vsel %vm405_vm8, %v401_v33, 0.0  ;;  %v343_v38 = vsel %vm319_vm9, %v313_v10, %v339_v34 }
 0x1eb   :  { %v408_v41 = vadd.f32 %v407_v35, %v406_v37  ;;  %v342_v42 = vsel %vm318_vm10, %v308_v13, %v338_v36  ;;  %v404_v44 = vmul.f32 %v399_v40, %v343_v38 }
 0x1ec   :  { %345 = vxpose.xlu1.b32.cont [2/4] (short) (narrow) %v341_v28, 8  ;;  %v403_v43 = vmul.f32 %v394_v39, %v342_v42 }
 0x1ed   :  { %v411_v47 = vsel %vm405_vm8, %v404_v44, 0.0 }
 0x1ee   :  { %v409_v45 = vsel %vm405_vm8, %v403_v43, 0.0 }
 0x1ef   :  { %v410_v46 = vadd.f32 %v409_v45, %v408_v41 }
 0x1f0   :  { %346 = vxpose.xlu1.b32.cont [3/4] (short) (narrow) %v342_v42, 8 }
 0x1f1   :  { %v412_v49 = vadd.f32 %v411_v47, %v410_v46 }
 0x1f3   :  { %v413_v50 = vrot.slane %v412_v49, 4 }
 0x1f4   :  { %347 = vxpose.xlu1.b32.end [4/4] (short) (narrow) %v343_v38, 8 }
 0x1f5   :  { %v414_v52 = vadd.f32 %v413_v50, %v412_v49 }
 0x1f7   :  { %v415_v53 = vrot.slane %v414_v52, 2 }
 0x1f9   :  { %v416_v55 = vadd.f32 %v415_v53, %v414_v52 }
 0x1fb   :  { %v417_v57 = vrot.slane %v416_v55, 1 }
 0x1fd   :  { %v418_v59 = vadd.f32 %v417_v57, %v416_v55 }
 0x1ff   :  { %v429_v60 = vadd.f32 %v428_v58, %v418_v59 }
 0x201   :  { %v430_v61 = vand.u32 2147483647, %v429_v60  ;;  %vm437_vm12 = vcmp.ge.f32.partialorder %v429_v60, 0.0 }
 0x203   :  { %v431_v62 = vsub.f32 0.0, %v430_v61 }
 0x205   :  { %v432_v63 = vmul.f32 1.442695, %v431_v62 }
 0x207   :  { %552 = vpow2.f32 %v432_v63 }
 0x211   :  { %v553_v0 = vpop.eup %552 }
 0x212   :  { %v434_v1 = vadd.f32 1.0, %v553_v0 }
 0x214   :  { %554 = vrcp.f32 %v434_v1 }
 0x21e   :  { %v555_v2 = vpop.eup %554 }
 0x21f   :  { %v438_v3 = vmul.f32 %v555_v2, %v553_v0 }
 0x221   :  { %v439_v4 = vsel %vm437_vm12, %v555_v2, %v438_v3 }
 0x222   :  { %441 = vst.msk [vmem:[#allocation3] sm:$0x1] %vm440_vm11, %v439_v4 }
 0x223   :  { %567 = shalt.err (!%p564_p4)
}
 0x224   :  { %s568_s24 = scalar_lea.hbm %s764_s7, 16 }
 0x225   :  { %p569_p5 = scmp.ne.s32.totalorder %s764_s7, %s568_s24  ;;  %p572_p6 = scmp.lt.u32.totalorder %s568_s24, %s764_s7 }
 0x227   :  { %p574_p7 = pnand %p572_p6, %p569_p5 }
 0x229   :  { %577 = shalt.err (!%p574_p7)
}
 0x22a   :  { %451 = dma.vmem_to_hbm [thread:$0]  %s449_s19, 16, %s764_s7, [#allocation4]  }
 0x22b   :  { %s606_s29 = smov [#allocation5]  }
 0x22c   :  { %s458_s30 = sshll.u32 %s606_s29, 4  ;;  %s459_s30 = int_to_ptr.vmem [resolvable:$true] %s458_s30 }
 0x22d   :  { %s578_s9 = scalar_lea.vmem %s459_s30, 128  ;;  %p583_p9 = scmp.lt.s32.totalorder %s459_s30, %s459_s30 }
 0x22e   :  { %p579_p8 = scmp.ne.s32.totalorder %s459_s30, %s578_s9  ;;  %p584_p10 = scmp.lt.s32.totalorder %s578_s9, %s578_s9 }
 0x230   :  { %p585_p11 = por %p584_p10, %p583_p9 }
 0x232   :  { %p586_p12 = pnand %p585_p11, %p579_p8 }
 0x268   :  { %v360_v5 = vpop.trf.xlu1 }
 0x269   :  { %376 = vst.msk [vmem:[#allocation5] sm:$0xff] %vm218_vm1, %v360_v5 }
 0x26a   :  { %589 = shalt.err (!%p586_p12)
}
 0x26b   :  { %s590_s12 = scalar_lea.hbm %s765_s8, 128 }
 0x26c   :  { %p591_p13 = scmp.ne.s32.totalorder %s765_s8, %s590_s12  ;;  %p594_p0 = scmp.lt.u32.totalorder %s590_s12, %s765_s8 }
 0x26e   :  { %p596_p1 = pnand %p594_p0, %p591_p13 }
 0x270   :  { %599 = shalt.err (!%p596_p1)
}
 0x271   :  { %461 = dma.vmem_to_hbm [thread:$0]  %s459_s30, 128, %s765_s8, [#allocation6]  }
 0x272   :  { %600 = dma.done.wait [#allocation4], 16  }
 0x273   :  { %601 = vsyncadd [#allocation4], 4294967280 }
 0x274   :  { %602 = dma.done.wait [#allocation6], 128  }
 0x275   :  { %603 = vsyncadd [#allocation6], 4294967168 }
 0x276   :  { %468 = vsyncpa [#allocation4], 1 }
 0x277   :  { %469 = vsyncpa [#allocation6], 1 }

</bundles_post_ra>
